<compile_context>
chip_gen: v6e
topology: v6e:2x2x1
jax: 0.10.0
libtpu: 0.0.40
codegen_flags: <defaults>
</compile_context>

<pallas_src>
import functools
import math

import jax
import jax.numpy as jnp
from jax.experimental import pallas as pl
from jax.experimental.pallas import tpu as pltpu

_LANES = 128
_SUBLANES = 8
_TILE_ROWS = 1024  # 1024 * 128 * 4 B = 512 KiB per buffer -> well under VMEM limits


def _poisson_gaussian_kernel(x_ref, u_ref, eps_ref, o_ref, *, gain, sigma, iters):
    """One (tile_rows, 128) tile: inverse-CDF Poisson sample + Gaussian term."""
    x = x_ref[...].astype(jnp.float32)
    u = u_ref[...]
    eps = eps_ref[...]

    lam = x if gain == 1.0 else x * jnp.float32(1.0 / gain)

    # Inverse-CDF sequential search with a single uniform per element:
    #   K = #{ j >= 0 : u >= F(j) },  F(j) = Poisson(lam) CDF at j.
    # Fully unrolled masked budget `iters` (tail probability beyond the budget
    # is < ~1e-12 for the supported lambda range, see wrapper).
    p = jnp.exp(-lam)                          # P(K = 0)
    s = p                                      # F(0)
    k = (u >= s).astype(jnp.float32)
    for i in range(1, iters):
        p = p * lam * jnp.float32(1.0 / i)     # P(K = i)
        s = s + p
        k = k + (u >= s).astype(jnp.float32)

    y = k if gain == 1.0 else k * jnp.float32(gain)
    o_ref[...] = (y + eps * jnp.float32(sigma)).astype(o_ref.dtype)


def poisson_gaussian_noise(x, gain=1.0, sigma=0.1, key=None, x_max=1.0):
    """JAX/Pallas equivalent of PoissonGaussianNoise.forward (NCHW input).

    `x_max` is an upper bound on the input values used to size the masked
    Poisson iteration budget (lambda_max ~= x_max / gain).
    """
    if key is None:
        key = jax.random.PRNGKey(0)

    gain = float(gain)
    sigma = float(sigma)
    orig_shape = x.shape
    orig_dtype = x.dtype
    out_dtype = orig_dtype if jnp.issubdtype(orig_dtype, jnp.floating) else jnp.float32

    # --- masked iteration budget from the lambda bound ----------------------
    # TODO(synk): torch.poisson supports arbitrary lambda via rejection
    # sampling; this truncated inverse-CDF search is only exact (to <1e-12
    # tail mass) for lambda up to ~x_max / gain.
    lam_max = max(1e-6, x_max / gain)
    iters = max(12, int(math.ceil(lam_max + 9.0 * math.sqrt(lam_max) + 6.0)))

    # --- flatten to a lane-dense (rows, 128) slab ----------------------------
    flat = x.reshape(-1).astype(jnp.float32)
    n = flat.shape[0]
    rows = pl.cdiv(n, _LANES)
    if rows >= _TILE_ROWS:
        tile_rows = _TILE_ROWS
    else:
        tile_rows = max(_SUBLANES, pl.cdiv(rows, _SUBLANES) * _SUBLANES)
    padded_rows = pl.cdiv(rows, tile_rows) * tile_rows
    pad = padded_rows * _LANES - n
    x2d = jnp.pad(flat, (0, pad)).reshape(padded_rows, _LANES)

    # --- randomness: one uniform + one normal per element --------------------
    ku, kn = jax.random.split(key)
    u2d = jax.random.uniform(ku, x2d.shape, dtype=jnp.float32)
    eps2d = jax.random.normal(kn, x2d.shape, dtype=jnp.float32)

    grid = (padded_rows // tile_rows,)
    tile_spec = pl.BlockSpec((tile_rows, _LANES), lambda i: (i, 0))

    kernel = functools.partial(
        _poisson_gaussian_kernel, gain=gain, sigma=sigma, iters=iters
    )

    n_pad = padded_rows * _LANES
    cost = pl.CostEstimate(
        flops=5 * iters * n_pad,                 # mul/mul/add/cmp/add per iter
        transcendentals=n_pad,                   # one exp(-lam) per element
        bytes_accessed=4 * 4 * n_pad,            # 3 inputs + 1 output, f32
    )

    out2d = pl.pallas_call(
        kernel,
        out_shape=jax.ShapeDtypeStruct(x2d.shape, out_dtype),
        grid=grid,
        in_specs=[tile_spec, tile_spec, tile_spec],
        out_specs=tile_spec,
        compiler_params=pltpu.CompilerParams(
            dimension_semantics=("parallel",),
        ),
        cost_estimate=cost,
    )(x2d, u2d, eps2d)

    out = out2d.reshape(-1)[:n].reshape(orig_shape)
    return out.astype(orig_dtype)


if __name__ == "__main__":
    key = jax.random.PRNGKey(0)
    # Small NCHW input consistent with the module's usage (images).
    x = jax.random.uniform(key, (2, 4, 16, 16), dtype=jnp.float32)

    y = poisson_gaussian_noise(x, gain=1.0, sigma=0.1, key=jax.random.PRNGKey(42))
    y = jax.block_until_ready(y)

    assert y.shape == x.shape and y.dtype == x.dtype
    assert bool(jnp.all(jnp.isfinite(y)))
    print("KERNEL_OK")
</pallas_src>

<mosaic_0001>
module attributes {stable_mosaic.version = 11 : i64} {
  func.func @_poisson_gaussian_kernel(%arg0: i32, %arg1: memref<16x128xf32, #tpu.memory_space<vmem>>, %arg2: memref<16x128xf32, #tpu.memory_space<vmem>>, %arg3: memref<16x128xf32, #tpu.memory_space<vmem>>, %arg4: memref<16x128xf32, #tpu.memory_space<vmem>>) attributes {dimension_semantics = [#tpu.dimension_semantics<parallel>], iteration_bounds = array<i64: 1>, scalar_prefetch = 0 : i64, scratch_operands = 0 : i64, tpu.core_type = #tpu.core_type<tc>, window_params = [{transform_indices = @transform_0, window_bounds = array<i64: 16, 128>}, {transform_indices = @transform_1, window_bounds = array<i64: 16, 128>}, {transform_indices = @transform_2, window_bounds = array<i64: 16, 128>}, {transform_indices = @transform_3, window_bounds = array<i64: 16, 128>}]} {
    %c0 = arith.constant 0 : index
    %c0_0 = arith.constant 0 : index
    %0 = vector.load %arg1[%c0, %c0_0] : memref<16x128xf32, #tpu.memory_space<vmem>>, vector<16x128xf32>
    %c0_1 = arith.constant 0 : index
    %c0_2 = arith.constant 0 : index
    %1 = vector.load %arg2[%c0_1, %c0_2] : memref<16x128xf32, #tpu.memory_space<vmem>>, vector<16x128xf32>
    %c0_3 = arith.constant 0 : index
    %c0_4 = arith.constant 0 : index
    %2 = vector.load %arg3[%c0_3, %c0_4] : memref<16x128xf32, #tpu.memory_space<vmem>>, vector<16x128xf32>
    %cst = arith.constant 0.000000e+00 : f32
    %3 = vector.broadcast %cst : f32 to vector<16x128xf32>
    %4 = arith.subf %3, %0 : vector<16x128xf32>
    %5 = math.exp %4 : vector<16x128xf32>
    %6 = arith.cmpf oge, %1, %5 : vector<16x128xf32>
    %7 = arith.extui %6 : vector<16x128xi1> to vector<16x128xi32>
    %8 = arith.sitofp %7 : vector<16x128xi32> to vector<16x128xf32>
    %9 = arith.mulf %5, %0 : vector<16x128xf32>
    %cst_5 = arith.constant 1.000000e+00 : f32
    %10 = vector.broadcast %cst_5 : f32 to vector<16x128xf32>
    %11 = arith.mulf %9, %10 : vector<16x128xf32>
    %12 = arith.addf %5, %11 : vector<16x128xf32>
    %13 = arith.cmpf oge, %1, %12 : vector<16x128xf32>
    %14 = arith.extui %13 : vector<16x128xi1> to vector<16x128xi32>
    %15 = arith.sitofp %14 : vector<16x128xi32> to vector<16x128xf32>
    %16 = arith.addf %8, %15 : vector<16x128xf32>
    %17 = arith.mulf %11, %0 : vector<16x128xf32>
    %cst_6 = arith.constant 5.000000e-01 : f32
    %18 = vector.broadcast %cst_6 : f32 to vector<16x128xf32>
    %19 = arith.mulf %17, %18 : vector<16x128xf32>
    %20 = arith.addf %12, %19 : vector<16x128xf32>
    %21 = arith.cmpf oge, %1, %20 : vector<16x128xf32>
    %22 = arith.extui %21 : vector<16x128xi1> to vector<16x128xi32>
    %23 = arith.sitofp %22 : vector<16x128xi32> to vector<16x128xf32>
    %24 = arith.addf %16, %23 : vector<16x128xf32>
    %25 = arith.mulf %19, %0 : vector<16x128xf32>
    %cst_7 = arith.constant 0.333333343 : f32
    %26 = vector.broadcast %cst_7 : f32 to vector<16x128xf32>
    %27 = arith.mulf %25, %26 : vector<16x128xf32>
    %28 = arith.addf %20, %27 : vector<16x128xf32>
    %29 = arith.cmpf oge, %1, %28 : vector<16x128xf32>
    %30 = arith.extui %29 : vector<16x128xi1> to vector<16x128xi32>
    %31 = arith.sitofp %30 : vector<16x128xi32> to vector<16x128xf32>
    %32 = arith.addf %24, %31 : vector<16x128xf32>
    %33 = arith.mulf %27, %0 : vector<16x128xf32>
    %cst_8 = arith.constant 2.500000e-01 : f32
    %34 = vector.broadcast %cst_8 : f32 to vector<16x128xf32>
    %35 = arith.mulf %33, %34 : vector<16x128xf32>
    %36 = arith.addf %28, %35 : vector<16x128xf32>
    %37 = arith.cmpf oge, %1, %36 : vector<16x128xf32>
    %38 = arith.extui %37 : vector<16x128xi1> to vector<16x128xi32>
    %39 = arith.sitofp %38 : vector<16x128xi32> to vector<16x128xf32>
    %40 = arith.addf %32, %39 : vector<16x128xf32>
    %41 = arith.mulf %35, %0 : vector<16x128xf32>
    %cst_9 = arith.constant 2.000000e-01 : f32
    %42 = vector.broadcast %cst_9 : f32 to vector<16x128xf32>
    %43 = arith.mulf %41, %42 : vector<16x128xf32>
    %44 = arith.addf %36, %43 : vector<16x128xf32>
    %45 = arith.cmpf oge, %1, %44 : vector<16x128xf32>
    %46 = arith.extui %45 : vector<16x128xi1> to vector<16x128xi32>
    %47 = arith.sitofp %46 : vector<16x128xi32> to vector<16x128xf32>
    %48 = arith.addf %40, %47 : vector<16x128xf32>
    %49 = arith.mulf %43, %0 : vector<16x128xf32>
    %cst_10 = arith.constant 0.166666672 : f32
    %50 = vector.broadcast %cst_10 : f32 to vector<16x128xf32>
    %51 = arith.mulf %49, %50 : vector<16x128xf32>
    %52 = arith.addf %44, %51 : vector<16x128xf32>
    %53 = arith.cmpf oge, %1, %52 : vector<16x128xf32>
    %54 = arith.extui %53 : vector<16x128xi1> to vector<16x128xi32>
    %55 = arith.sitofp %54 : vector<16x128xi32> to vector<16x128xf32>
    %56 = arith.addf %48, %55 : vector<16x128xf32>
    %57 = arith.mulf %51, %0 : vector<16x128xf32>
    %cst_11 = arith.constant 0.142857149 : f32
    %58 = vector.broadcast %cst_11 : f32 to vector<16x128xf32>
    %59 = arith.mulf %57, %58 : vector<16x128xf32>
    %60 = arith.addf %52, %59 : vector<16x128xf32>
    %61 = arith.cmpf oge, %1, %60 : vector<16x128xf32>
    %62 = arith.extui %61 : vector<16x128xi1> to vector<16x128xi32>
    %63 = arith.sitofp %62 : vector<16x128xi32> to vector<16x128xf32>
    %64 = arith.addf %56, %63 : vector<16x128xf32>
    %65 = arith.mulf %59, %0 : vector<16x128xf32>
    %cst_12 = arith.constant 1.250000e-01 : f32
    %66 = vector.broadcast %cst_12 : f32 to vector<16x128xf32>
    %67 = arith.mulf %65, %66 : vector<16x128xf32>
    %68 = arith.addf %60, %67 : vector<16x128xf32>
    %69 = arith.cmpf oge, %1, %68 : vector<16x128xf32>
    %70 = arith.extui %69 : vector<16x128xi1> to vector<16x128xi32>
    %71 = arith.sitofp %70 : vector<16x128xi32> to vector<16x128xf32>
    %72 = arith.addf %64, %71 : vector<16x128xf32>
    %73 = arith.mulf %67, %0 : vector<16x128xf32>
    %cst_13 = arith.constant 0.111111112 : f32
    %74 = vector.broadcast %cst_13 : f32 to vector<16x128xf32>
    %75 = arith.mulf %73, %74 : vector<16x128xf32>
    %76 = arith.addf %68, %75 : vector<16x128xf32>
    %77 = arith.cmpf oge, %1, %76 : vector<16x128xf32>
    %78 = arith.extui %77 : vector<16x128xi1> to vector<16x128xi32>
    %79 = arith.sitofp %78 : vector<16x128xi32> to vector<16x128xf32>
    %80 = arith.addf %72, %79 : vector<16x128xf32>
    %81 = arith.mulf %75, %0 : vector<16x128xf32>
    %cst_14 = arith.constant 1.000000e-01 : f32
    %82 = vector.broadcast %cst_14 : f32 to vector<16x128xf32>
    %83 = arith.mulf %81, %82 : vector<16x128xf32>
    %84 = arith.addf %76, %83 : vector<16x128xf32>
    %85 = arith.cmpf oge, %1, %84 : vector<16x128xf32>
    %86 = arith.extui %85 : vector<16x128xi1> to vector<16x128xi32>
    %87 = arith.sitofp %86 : vector<16x128xi32> to vector<16x128xf32>
    %88 = arith.addf %80, %87 : vector<16x128xf32>
    %89 = arith.mulf %83, %0 : vector<16x128xf32>
    %cst_15 = arith.constant 0.0909090936 : f32
    %90 = vector.broadcast %cst_15 : f32 to vector<16x128xf32>
    %91 = arith.mulf %89, %90 : vector<16x128xf32>
    %92 = arith.addf %84, %91 : vector<16x128xf32>
    %93 = arith.cmpf oge, %1, %92 : vector<16x128xf32>
    %94 = arith.extui %93 : vector<16x128xi1> to vector<16x128xi32>
    %95 = arith.sitofp %94 : vector<16x128xi32> to vector<16x128xf32>
    %96 = arith.addf %88, %95 : vector<16x128xf32>
    %97 = arith.mulf %91, %0 : vector<16x128xf32>
    %cst_16 = arith.constant 0.0833333358 : f32
    %98 = vector.broadcast %cst_16 : f32 to vector<16x128xf32>
    %99 = arith.mulf %97, %98 : vector<16x128xf32>
    %100 = arith.addf %92, %99 : vector<16x128xf32>
    %101 = arith.cmpf oge, %1, %100 : vector<16x128xf32>
    %102 = arith.extui %101 : vector<16x128xi1> to vector<16x128xi32>
    %103 = arith.sitofp %102 : vector<16x128xi32> to vector<16x128xf32>
    %104 = arith.addf %96, %103 : vector<16x128xf32>
    %105 = arith.mulf %99, %0 : vector<16x128xf32>
    %cst_17 = arith.constant 0.0769230798 : f32
    %106 = vector.broadcast %cst_17 : f32 to vector<16x128xf32>
    %107 = arith.mulf %105, %106 : vector<16x128xf32>
    %108 = arith.addf %100, %107 : vector<16x128xf32>
    %109 = arith.cmpf oge, %1, %108 : vector<16x128xf32>
    %110 = arith.extui %109 : vector<16x128xi1> to vector<16x128xi32>
    %111 = arith.sitofp %110 : vector<16x128xi32> to vector<16x128xf32>
    %112 = arith.addf %104, %111 : vector<16x128xf32>
    %113 = arith.mulf %107, %0 : vector<16x128xf32>
    %cst_18 = arith.constant 0.0714285746 : f32
    %114 = vector.broadcast %cst_18 : f32 to vector<16x128xf32>
    %115 = arith.mulf %113, %114 : vector<16x128xf32>
    %116 = arith.addf %108, %115 : vector<16x128xf32>
    %117 = arith.cmpf oge, %1, %116 : vector<16x128xf32>
    %118 = arith.extui %117 : vector<16x128xi1> to vector<16x128xi32>
    %119 = arith.sitofp %118 : vector<16x128xi32> to vector<16x128xf32>
    %120 = arith.addf %112, %119 : vector<16x128xf32>
    %121 = arith.mulf %115, %0 : vector<16x128xf32>
    %cst_19 = arith.constant 0.0666666701 : f32
    %122 = vector.broadcast %cst_19 : f32 to vector<16x128xf32>
    %123 = arith.mulf %121, %122 : vector<16x128xf32>
    %124 = arith.addf %116, %123 : vector<16x128xf32>
    %125 = arith.cmpf oge, %1, %124 : vector<16x128xf32>
    %126 = arith.extui %125 : vector<16x128xi1> to vector<16x128xi32>
    %127 = arith.sitofp %126 : vector<16x128xi32> to vector<16x128xf32>
    %128 = arith.addf %120, %127 : vector<16x128xf32>
    %cst_20 = arith.constant 1.000000e-01 : f32
    %129 = vector.broadcast %cst_20 : f32 to vector<16x128xf32>
    %130 = arith.mulf %2, %129 : vector<16x128xf32>
    %131 = arith.addf %128, %130 : vector<16x128xf32>
    %c0_21 = arith.constant 0 : index
    %c0_22 = arith.constant 0 : index
    %132 = vector.load %arg4[%c0_21, %c0_22] : memref<16x128xf32, #tpu.memory_space<vmem>>, vector<16x128xf32>
    tpu.vector_store %arg4[%c0_21, %c0_22], %131 {strides = array<i32>} : memref<16x128xf32, #tpu.memory_space<vmem>>, vector<16x128xf32>,
    return
  }
  func.func @transform_0(%arg0: i32) -> (i32, i32) {
    %c0_i32 = arith.constant 0 : i32
    %c0_i32_0 = arith.constant 0 : i32
    return %arg0, %c0_i32 : i32, i32
  }
  func.func @transform_1(%arg0: i32) -> (i32, i32) {
    %c0_i32 = arith.constant 0 : i32
    %c0_i32_0 = arith.constant 0 : i32
    return %arg0, %c0_i32 : i32, i32
  }
  func.func @transform_2(%arg0: i32) -> (i32, i32) {
    %c0_i32 = arith.constant 0 : i32
    %c0_i32_0 = arith.constant 0 : i32
    return %arg0, %c0_i32 : i32, i32
  }
  func.func @transform_3(%arg0: i32) -> (i32, i32) {
    %c0_i32 = arith.constant 0 : i32
    %c0_i32_0 = arith.constant 0 : i32
    return %arg0, %c0_i32 : i32, i32
  }
}

</mosaic_0001>

<bundles_post_ra>
// kernel: tpu_custom_call.1
= control target key start
LH: loop header
LB: loop body
LE: loop exit
PB: predicated region body
PF: predicated region fallthrough
CT: control target
= control target key end

     0   :  { %8 = vsyncpa [#allocation3], 0  ;;  %s590_s0 = inlined_call_operand.hbm [shape: f32[16,128], index: 0, kind: input, shape index: {}]   ;;  %s591_s1 = inlined_call_operand.hbm [shape: f32[16,128], index: 1, kind: input, shape index: {}]   ;;  %s592_s2 = inlined_call_operand.hbm [shape: f32[16,128], index: 2, kind: input, shape index: {}]   ;;  %s593_s3 = inlined_call_operand.hbm [shape: f32[16,128], index: 3, kind: output, shape index: {}]  }
   0x1   :  { %9 = vsyncpa [#allocation6], 0 }
   0x2   :  { %10 = vsyncpa [#allocation4], 0  ;;  %s435_s12 = smov [#allocation5]   ;;  %s436_s14 = smov [#allocation2]  }
   0x3   :  { %s28_s13 = sshll.u32 %s435_s12, 4  ;;  %s16_s15 = sshll.u32 %s436_s14, 4  ;;  %s29_s13 = int_to_ptr.vmem [resolvable:$true] %s28_s13  ;;  %s17_s15 = int_to_ptr.vmem [resolvable:$true] %s16_s15 }
   0x4   :  { %s357_s16 = scalar_lea.vmem %s29_s13, 256  ;;  %p362_p1 = scmp.lt.s32.totalorder %s29_s13, %s29_s13 }
   0x5   :  { %p358_p0 = scmp.ne.s32.totalorder %s29_s13, %s357_s16  ;;  %p363_p2 = scmp.lt.s32.totalorder %s357_s16, %s357_s16 }
   0x7   :  { %p364_p3 = por %p363_p2, %p362_p1 }
   0x9   :  { %p365_p4 = pnand %p364_p3, %p358_p0 }
   0xb   :  { %368 = shalt.err (!%p365_p4)
}
   0xc   :  { %s437_s17 = smov 128   ;;  %s438_s18 = smov 8  }
   0xd   :  { %34 = dma.hbm_to_vmem [thread:$0]  %s591_s1, 256, %s29_s13, [#allocation6], %s437_s17, %s437_s17, %s438_s18  }
   0xe   :  { %s377_s21 = scalar_lea.vmem %s17_s15, 256  ;;  %p382_p6 = scmp.lt.s32.totalorder %s17_s15, %s17_s15 }
   0xf   :  { %p378_p5 = scmp.ne.s32.totalorder %s17_s15, %s377_s21  ;;  %p383_p7 = scmp.lt.s32.totalorder %s377_s21, %s377_s21 }
  0x11   :  { %p384_p8 = por %p383_p7, %p382_p6 }
  0x13   :  { %p385_p9 = pnand %p384_p8, %p378_p5 }
  0x15   :  { %388 = shalt.err (!%p385_p9)
}
  0x16   :  { %22 = dma.hbm_to_vmem [thread:$0]  %s590_s0, 256, %s17_s15, [#allocation3], %s437_s17, %s437_s17, %s438_s18  }
  0x17   :  { %s439_s24 = smov [#allocation7]  }
  0x18   :  { %s40_s25 = sshll.u32 %s439_s24, 4  ;;  %s41_s25 = int_to_ptr.vmem [resolvable:$true] %s40_s25 }
  0x19   :  { %s397_s26 = scalar_lea.vmem %s41_s25, 256  ;;  %p402_p11 = scmp.lt.s32.totalorder %s41_s25, %s41_s25 }
  0x1a   :  { %p398_p10 = scmp.ne.s32.totalorder %s41_s25, %s397_s26  ;;  %p403_p12 = scmp.lt.s32.totalorder %s397_s26, %s397_s26 }
  0x1c   :  { %p404_p13 = por %p403_p12, %p402_p11 }
  0x1e   :  { %p405_p0 = pnand %p404_p13, %p398_p10 }
  0x20   :  { %408 = shalt.err (!%p405_p0)
}
  0x21   :  { %46 = dma.hbm_to_vmem [thread:$0]  %s592_s2, 256, %s41_s25, [#allocation6], %s437_s17, %s437_s17, %s438_s18  }
  0x22   :  { %429 = dma.done.wait [#allocation3], 256  }
  0x23   :  { %430 = vsyncadd [#allocation3], 4294967040 }
  0x24   :  { %431 = dma.done.wait [#allocation6], 512  }
  0x25   :  { %432 = vsyncadd [#allocation6], 4294966784  ;;  %v480_v0 = vld [vmem:[#allocation2] sm:$0xff]  ;;  %v483_v2 = vld [vmem:[#allocation2 + $0x8] sm:$0xff]  ;;  %v440_v14 = vmov 0.0   ;;  %s441_s0 = smov [#allocation8]  }
  0x26   :  { %v62_v1 = vsub.f32 0.0, %v480_v0  ;;  %v63_v3 = vsub.f32 0.0, %v483_v2  ;;  %v486_v6 = vld [vmem:[#allocation5] sm:$0xff]  ;;  %v488_v7 = vld [vmem:[#allocation5 + $0x8] sm:$0xff]  ;;  %s293_s2 = sshll.u32 %s441_s0, 4  ;;  %s294_s2 = int_to_ptr.vmem [resolvable:$true] %s293_s2 }
  0x27   :  { %s409_s28 = scalar_lea.vmem %s294_s2, 256  ;;  %p414_p2 = scmp.lt.s32.totalorder %s294_s2, %s294_s2 }
  0x28   :  { %v64_v4 = vmul.f32 1.442695, %v62_v1  ;;  %v66_v5 = vmul.f32 1.442695, %v63_v3  ;;  %p410_p1 = scmp.ne.s32.totalorder %s294_s2, %s409_s28  ;;  %p415_p3 = scmp.lt.s32.totalorder %s409_s28, %s409_s28 }
  0x2a   :  { %345 = vpow2.f32 %v64_v4  ;;  %p416_p4 = por %p415_p3, %p414_p2 }
  0x2b   :  { %347 = vpow2.f32 %v66_v5 }
  0x2c   :  { %p417_p5 = pnand %p416_p4, %p410_p1 }
  0x37   :  { %v346_v8 = vpop.eup %345 }
  0x38   :  { %v348_v9 = vpop.eup %347  ;;  %vm68_vm0 = vcmp.ge.f32.partialorder %v486_v6, %v346_v8  ;;  %v74_v10 = vmul.f32 %v346_v8, %v480_v0 }
  0x39   :  { %vm69_vm1 = vcmp.ge.f32.partialorder %v488_v7, %v348_v9  ;;  %v75_v11 = vmul.f32 %v348_v9, %v483_v2  ;;  %v306_v15 = vsel %vm68_vm0, 1.0, %v440_v14 }
  0x3a   :  { %v76_v12 = vadd.f32 %v346_v8, %v74_v10  ;;  %v86_v13 = vmul.f32 %v74_v10, %v480_v0  ;;  %v307_v19 = vsel %vm69_vm1, 1.0, %v440_v14 }
  0x3b   :  { %v77_v16 = vadd.f32 %v348_v9, %v75_v11  ;;  %v87_v17 = vmul.f32 %v75_v11, %v483_v2 }
  0x3c   :  { %vm78_vm2 = vcmp.ge.f32.partialorder %v486_v6, %v76_v12  ;;  %v88_v18 = vmul.f32 0.5, %v86_v13 }
  0x3d   :  { %v308_v20 = vsel %vm78_vm2, 1.0, %v440_v14  ;;  %vm79_vm3 = vcmp.ge.f32.partialorder %v488_v7, %v77_v16  ;;  %v89_v21 = vmul.f32 0.5, %v87_v17 }
  0x3e   :  { %v84_v22 = vadd.f32 %v308_v20, %v306_v15  ;;  %v90_v23 = vadd.f32 %v88_v18, %v76_v12  ;;  %v100_v24 = vmul.f32 %v88_v18, %v480_v0  ;;  %v309_v25 = vsel %vm79_vm3, 1.0, %v440_v14 }
  0x3f   :  { %v85_v26 = vadd.f32 %v309_v25, %v307_v19  ;;  %v91_v27 = vadd.f32 %v89_v21, %v77_v16  ;;  %v101_v28 = vmul.f32 %v89_v21, %v483_v2 }
  0x40   :  { %vm92_vm4 = vcmp.ge.f32.partialorder %v486_v6, %v90_v23  ;;  %v102_v29 = vmul.f32 0.33333334, %v100_v24 }
  0x41   :  { %v310_v30 = vsel %vm92_vm4, 1.0, %v440_v14  ;;  %vm93_vm5 = vcmp.ge.f32.partialorder %v488_v7, %v91_v27  ;;  %v103_v31 = vmul.f32 0.33333334, %v101_v28 }
  0x42   :  { %v98_v32 = vadd.f32 %v310_v30, %v84_v22  ;;  %v104_v33 = vadd.f32 %v102_v29, %v90_v23  ;;  %v114_v34 = vmul.f32 %v102_v29, %v480_v0  ;;  %v311_v35 = vsel %vm93_vm5, 1.0, %v440_v14 }
  0x43   :  { %v99_v36 = vadd.f32 %v311_v35, %v85_v26  ;;  %v105_v37 = vadd.f32 %v103_v31, %v91_v27  ;;  %v115_v38 = vmul.f32 %v103_v31, %v483_v2 }
  0x44   :  { %vm106_vm6 = vcmp.ge.f32.partialorder %v486_v6, %v104_v33  ;;  %v116_v39 = vmul.f32 0.25, %v114_v34 }
  0x45   :  { %v312_v40 = vsel %vm106_vm6, 1.0, %v440_v14  ;;  %vm107_vm7 = vcmp.ge.f32.partialorder %v488_v7, %v105_v37  ;;  %v117_v41 = vmul.f32 0.25, %v115_v38 }
  0x46   :  { %v112_v42 = vadd.f32 %v312_v40, %v98_v32  ;;  %v118_v43 = vadd.f32 %v116_v39, %v104_v33  ;;  %v128_v44 = vmul.f32 %v116_v39, %v480_v0  ;;  %v313_v45 = vsel %vm107_vm7, 1.0, %v440_v14 }
  0x47   :  { %v113_v46 = vadd.f32 %v313_v45, %v99_v36  ;;  %v119_v47 = vadd.f32 %v117_v41, %v105_v37  ;;  %v129_v48 = vmul.f32 %v117_v41, %v483_v2 }
  0x48   :  { %vm120_vm8 = vcmp.ge.f32.partialorder %v486_v6, %v118_v43  ;;  %v130_v49 = vmul.f32 0.2, %v128_v44 }
  0x49   :  { %v314_v50 = vsel %vm120_vm8, 1.0, %v440_v14  ;;  %vm121_vm9 = vcmp.ge.f32.partialorder %v488_v7, %v119_v47  ;;  %v131_v51 = vmul.f32 0.2, %v129_v48 }
  0x4a   :  { %v126_v52 = vadd.f32 %v314_v50, %v112_v42  ;;  %v132_v53 = vadd.f32 %v130_v49, %v118_v43  ;;  %v142_v54 = vmul.f32 %v130_v49, %v480_v0  ;;  %v315_v55 = vsel %vm121_vm9, 1.0, %v440_v14 }
  0x4b   :  { %v127_v56 = vadd.f32 %v315_v55, %v113_v46  ;;  %v133_v57 = vadd.f32 %v131_v51, %v119_v47  ;;  %v143_v58 = vmul.f32 %v131_v51, %v483_v2 }
  0x4c   :  { %vm134_vm10 = vcmp.ge.f32.partialorder %v486_v6, %v132_v53  ;;  %v144_v59 = vmul.f32 0.16666667, %v142_v54 }
  0x4d   :  { %v316_v60 = vsel %vm134_vm10, 1.0, %v440_v14  ;;  %vm135_vm11 = vcmp.ge.f32.partialorder %v488_v7, %v133_v57  ;;  %v145_v61 = vmul.f32 0.16666667, %v143_v58 }
  0x4e   :  { %v140_v62 = vadd.f32 %v316_v60, %v126_v52  ;;  %v146_v63 = vadd.f32 %v144_v59, %v132_v53  ;;  %v156_v1 = vmul.f32 %v144_v59, %v480_v0  ;;  %v317_v3 = vsel %vm135_vm11, 1.0, %v440_v14 }
  0x4f   :  { %v141_v4 = vadd.f32 %v317_v3, %v127_v56  ;;  %v147_v5 = vadd.f32 %v145_v61, %v133_v57  ;;  %v157_v8 = vmul.f32 %v145_v61, %v483_v2 }
  0x50   :  { %vm148_vm12 = vcmp.ge.f32.partialorder %v486_v6, %v146_v63  ;;  %v158_v9 = vmul.f32 0.14285715, %v156_v1 }
  0x51   :  { %v318_v10 = vsel %vm148_vm12, 1.0, %v440_v14  ;;  %vm149_vm13 = vcmp.ge.f32.partialorder %v488_v7, %v147_v5  ;;  %v159_v11 = vmul.f32 0.14285715, %v157_v8 }
  0x52   :  { %v154_v12 = vadd.f32 %v318_v10, %v140_v62  ;;  %v160_v13 = vadd.f32 %v158_v9, %v146_v63  ;;  %v170_v15 = vmul.f32 %v158_v9, %v480_v0  ;;  %v319_v16 = vsel %vm149_vm13, 1.0, %v440_v14 }
  0x53   :  { %v155_v17 = vadd.f32 %v319_v16, %v141_v4  ;;  %v161_v18 = vadd.f32 %v159_v11, %v147_v5  ;;  %v171_v19 = vmul.f32 %v159_v11, %v483_v2 }
  0x54   :  { %vm162_vm14 = vcmp.ge.f32.partialorder %v486_v6, %v160_v13  ;;  %v172_v20 = vmul.f32 0.125, %v170_v15 }
  0x55   :  { %v320_v21 = vsel %vm162_vm14, 1.0, %v440_v14  ;;  %vm163_vm15 = vcmp.ge.f32.partialorder %v488_v7, %v161_v18  ;;  %v173_v22 = vmul.f32 0.125, %v171_v19 }
  0x56   :  { %v168_v23 = vadd.f32 %v320_v21, %v154_v12  ;;  %v174_v24 = vadd.f32 %v172_v20, %v160_v13  ;;  %v184_v25 = vmul.f32 %v172_v20, %v480_v0  ;;  %v321_v26 = vsel %vm163_vm15, 1.0, %v440_v14 }
  0x57   :  { %v169_v27 = vadd.f32 %v321_v26, %v155_v17  ;;  %v175_v28 = vadd.f32 %v173_v22, %v161_v18  ;;  %v185_v29 = vmul.f32 %v173_v22, %v483_v2 }
  0x58   :  { %vm176_vm0 = vcmp.ge.f32.partialorder %v486_v6, %v174_v24  ;;  %v186_v30 = vmul.f32 0.11111111, %v184_v25 }
  0x59   :  { %v322_v31 = vsel %vm176_vm0, 1.0, %v440_v14  ;;  %vm177_vm1 = vcmp.ge.f32.partialorder %v488_v7, %v175_v28  ;;  %v187_v32 = vmul.f32 0.11111111, %v185_v29 }
  0x5a   :  { %v182_v33 = vadd.f32 %v322_v31, %v168_v23  ;;  %v188_v34 = vadd.f32 %v186_v30, %v174_v24  ;;  %v198_v35 = vmul.f32 %v186_v30, %v480_v0  ;;  %v323_v36 = vsel %vm177_vm1, 1.0, %v440_v14 }
  0x5b   :  { %v183_v37 = vadd.f32 %v323_v36, %v169_v27  ;;  %v189_v38 = vadd.f32 %v187_v32, %v175_v28  ;;  %v199_v39 = vmul.f32 %v187_v32, %v483_v2  ;;  %v60_v32 = vld [vmem:[#allocation7] sm:$0xff] }
  0x5c   :  { %vm190_vm2 = vcmp.ge.f32.partialorder %v486_v6, %v188_v34  ;;  %v200_v40 = vmul.f32 0.1, %v198_v35 }
  0x5d   :  { %v324_v41 = vsel %vm190_vm2, 1.0, %v440_v14  ;;  %vm191_vm3 = vcmp.ge.f32.partialorder %v488_v7, %v189_v38  ;;  %v201_v42 = vmul.f32 0.1, %v199_v39 }
  0x5e   :  { %v196_v43 = vadd.f32 %v324_v41, %v182_v33  ;;  %v202_v44 = vadd.f32 %v200_v40, %v188_v34  ;;  %v212_v45 = vmul.f32 %v200_v40, %v480_v0  ;;  %v325_v46 = vsel %vm191_vm3, 1.0, %v440_v14 }
  0x5f   :  { %v197_v47 = vadd.f32 %v325_v46, %v183_v37  ;;  %v203_v48 = vadd.f32 %v201_v42, %v189_v38  ;;  %v213_v49 = vmul.f32 %v201_v42, %v483_v2  ;;  %v61_v37 = vld [vmem:[#allocation7 + $0x8] sm:$0xff]  ;;  %v282_v40 = vmul.f32 0.1, %v60_v32 }
  0x60   :  { %vm204_vm4 = vcmp.ge.f32.partialorder %v486_v6, %v202_v44  ;;  %v214_v50 = vmul.f32 0.09090909, %v212_v45  ;;  %v283_v41 = vmul.f32 0.1, %v61_v37 }
  0x61   :  { %v326_v51 = vsel %vm204_vm4, 1.0, %v440_v14  ;;  %vm205_vm5 = vcmp.ge.f32.partialorder %v488_v7, %v203_v48  ;;  %v215_v52 = vmul.f32 0.09090909, %v213_v49 }
  0x62   :  { %v210_v53 = vadd.f32 %v326_v51, %v196_v43  ;;  %v216_v54 = vadd.f32 %v214_v50, %v202_v44  ;;  %v226_v55 = vmul.f32 %v214_v50, %v480_v0  ;;  %v327_v56 = vsel %vm205_vm5, 1.0, %v440_v14 }
  0x63   :  { %v211_v57 = vadd.f32 %v327_v56, %v197_v47  ;;  %v217_v58 = vadd.f32 %v215_v52, %v203_v48  ;;  %v227_v59 = vmul.f32 %v215_v52, %v483_v2 }
  0x64   :  { %vm218_vm6 = vcmp.ge.f32.partialorder %v486_v6, %v216_v54  ;;  %v228_v60 = vmul.f32 0.083333336, %v226_v55 }
  0x65   :  { %v328_v61 = vsel %vm218_vm6, 1.0, %v440_v14  ;;  %vm219_vm7 = vcmp.ge.f32.partialorder %v488_v7, %v217_v58  ;;  %v229_v62 = vmul.f32 0.083333336, %v227_v59 }
  0x66   :  { %v224_v63 = vadd.f32 %v328_v61, %v210_v53  ;;  %v230_v1 = vadd.f32 %v228_v60, %v216_v54  ;;  %v240_v3 = vmul.f32 %v228_v60, %v480_v0  ;;  %v329_v4 = vsel %vm219_vm7, 1.0, %v440_v14 }
  0x67   :  { %v225_v5 = vadd.f32 %v329_v4, %v211_v57  ;;  %v231_v8 = vadd.f32 %v229_v62, %v217_v58  ;;  %v241_v9 = vmul.f32 %v229_v62, %v483_v2 }
  0x68   :  { %vm232_vm8 = vcmp.ge.f32.partialorder %v486_v6, %v230_v1  ;;  %v242_v10 = vmul.f32 0.07692308, %v240_v3 }
  0x69   :  { %v330_v11 = vsel %vm232_vm8, 1.0, %v440_v14  ;;  %vm233_vm9 = vcmp.ge.f32.partialorder %v488_v7, %v231_v8  ;;  %v243_v12 = vmul.f32 0.07692308, %v241_v9 }
  0x6a   :  { %v238_v13 = vadd.f32 %v330_v11, %v224_v63  ;;  %v244_v15 = vadd.f32 %v242_v10, %v230_v1  ;;  %v254_v16 = vmul.f32 %v242_v10, %v480_v0  ;;  %v331_v17 = vsel %vm233_vm9, 1.0, %v440_v14 }
  0x6b   :  { %v239_v18 = vadd.f32 %v331_v17, %v225_v5  ;;  %v245_v19 = vadd.f32 %v243_v12, %v231_v8  ;;  %v255_v20 = vmul.f32 %v243_v12, %v483_v2 }
  0x6c   :  { %vm246_vm10 = vcmp.ge.f32.partialorder %v486_v6, %v244_v15  ;;  %v256_v21 = vmul.f32 0.071428575, %v254_v16 }
  0x6d   :  { %v332_v22 = vsel %vm246_vm10, 1.0, %v440_v14  ;;  %vm247_vm11 = vcmp.ge.f32.partialorder %v488_v7, %v245_v19  ;;  %v257_v23 = vmul.f32 0.071428575, %v255_v20 }
  0x6e   :  { %v252_v24 = vadd.f32 %v332_v22, %v238_v13  ;;  %v258_v25 = vadd.f32 %v256_v21, %v244_v15  ;;  %v268_v26 = vmul.f32 %v256_v21, %v480_v0  ;;  %v333_v27 = vsel %vm247_vm11, 1.0, %v440_v14 }
  0x6f   :  { %v253_v28 = vadd.f32 %v333_v27, %v239_v18  ;;  %v259_v29 = vadd.f32 %v257_v23, %v245_v19  ;;  %v269_v30 = vmul.f32 %v257_v23, %v483_v2 }
  0x70   :  { %vm260_vm12 = vcmp.ge.f32.partialorder %v486_v6, %v258_v25  ;;  %v270_v31 = vmul.f32 0.06666667, %v268_v26 }
  0x71   :  { %v334_v33 = vsel %vm260_vm12, 1.0, %v440_v14  ;;  %vm261_vm13 = vcmp.ge.f32.partialorder %v488_v7, %v259_v29  ;;  %v271_v34 = vmul.f32 0.06666667, %v269_v30 }
  0x72   :  { %v266_v35 = vadd.f32 %v334_v33, %v252_v24  ;;  %v272_v36 = vadd.f32 %v270_v31, %v258_v25  ;;  %v335_v0 = vsel %vm261_vm13, 1.0, %v440_v14 }
  0x73   :  { %v267_v38 = vadd.f32 %v335_v0, %v253_v28  ;;  %v273_v39 = vadd.f32 %v271_v34, %v259_v29 }
  0x74   :  { %vm274_vm14 = vcmp.ge.f32.partialorder %v486_v6, %v272_v36 }
  0x75   :  { %v336_v2 = vsel %vm274_vm14, 1.0, %v440_v14  ;;  %vm275_vm15 = vcmp.ge.f32.partialorder %v488_v7, %v273_v39 }
  0x76   :  { %v280_v42 = vadd.f32 %v336_v2, %v266_v35  ;;  %v337_v43 = vsel %vm275_vm15, 1.0, %v440_v14 }
  0x77   :  { %v281_v44 = vadd.f32 %v337_v43, %v267_v38 }
  0x78   :  { %v284_v45 = vadd.f32 %v282_v40, %v280_v42 }
  0x79   :  { %v285_v46 = vadd.f32 %v283_v41, %v281_v44 }
  0x7a   :  { %286 = vst [vmem:[#allocation8] sm:$0xff] %v284_v45 }
  0x7b   :  { %287 = vst [vmem:[#allocation8 + $0x8] sm:$0xff] %v285_v46 }
  0x7c   :  { %420 = shalt.err (!%p417_p5)
}
  0x7d   :  { %299 = dma.vmem_to_hbm [thread:$0]  %s294_s2, 256, %s593_s3, [#allocation4], %s437_s17, %s437_s17, %s438_s18  }
  0x7e   :  { %433 = dma.done.wait [#allocation4], 256  }
  0x7f   :  { %434 = vsyncadd [#allocation4], 4294967040 }
  0x80   :  { %303 = vsyncpa [#allocation3], 1 }
  0x81   :  { %304 = vsyncpa [#allocation6], 1 }
  0x82   :  { %305 = vsyncpa [#allocation4], 1 }

</bundles_post_ra>
